<compile_context>
chip_gen: v6e
topology: v6e:2x2x1
jax: 0.10.0
libtpu: 0.0.40
codegen_flags: <defaults>
</compile_context>

<pallas_src>
import functools
import math

import jax
import jax.numpy as jnp
from jax.experimental import pallas as pl
from jax.experimental.pallas import tpu as pltpu


def _sinusoidal_kernel(t_ref, freqs_ref, out_ref, *, lane_aligned: bool):
    # t_ref:     (TILE_B, 1)     float32   (batch on sublanes)
    # freqs_ref: (1, half_dim)   float32   (grid-invariant, VMEM resident)
    # out_ref:   (TILE_B, dim)   out_dtype (embedding dim on lanes)
    half_dim = freqs_ref.shape[1]

    # VPU broadcast multiply: (TILE_B, 1) x (1, half_dim) -> (TILE_B, half_dim)
    args = t_ref[...] * freqs_ref[...]
    s = jnp.sin(args)
    c = jnp.cos(args)

    if lane_aligned:
        # half_dim % 128 == 0: both slice stores are unmasked lane-dense vst.
        out_ref[:, :half_dim] = s.astype(out_ref.dtype)
        out_ref[:, half_dim:] = c.astype(out_ref.dtype)
    else:
        # half_dim not lane aligned: a split store would start mid-vreg
        # (masked vst + lane rotate).  One full-block store instead.
        out_ref[...] = jnp.concatenate([s, c], axis=-1).astype(out_ref.dtype)


def _pick_tile(B: int, dim: int, itemsize: int, *, max_tile: int,
               vmem_budget_bytes: int) -> int:
    """Rows per block.  Output double buffer (2*tile*dim*itemsize) dominates."""
    tile = vmem_budget_bytes // (2 * dim * itemsize)
    tile = min(tile, max_tile)
    if B > 2048:
        # Keep >= 2 grid steps so both v7x TensorCores get work.
        tile = min(tile, -(-B // 2))
    tile = max(8, (tile // 8) * 8)
    if B <= tile:
        return B  # single full-batch block (always a legal block shape)
    return tile


def sinusoidal_position_embeddings(
    time: jax.Array,
    dim: int,
    *,
    out_dtype=jnp.float32,
    max_tile: int = 4096,
    vmem_budget_bytes: int = 8 * 1024 * 1024,
) -> jax.Array:
    """time: (B,) -> (B, dim) sinusoidal position embeddings."""
    assert dim % 2 == 0 and dim >= 4, "dim must be even and >= 4"
    half_dim = dim // 2
    B = time.shape[0]

    # Hoisted frequency table (batch-independent); constant-folded by XLA and
    # bit-identical to the reference.
    scale = math.log(10000.0) / (half_dim - 1)
    freqs = jnp.exp(jnp.arange(half_dim, dtype=jnp.float32) * -scale)
    freqs = freqs.reshape(1, half_dim)

    t2d = time.astype(jnp.float32).reshape(B, 1)

    itemsize = jnp.dtype(out_dtype).itemsize
    tile = _pick_tile(B, dim, itemsize, max_tile=max_tile,
                      vmem_budget_bytes=vmem_budget_bytes)
    grid = (pl.cdiv(B, tile),)  # ragged boundary block is masked on writeback

    kernel = functools.partial(_sinusoidal_kernel,
                               lane_aligned=(half_dim % 128 == 0))

    cost = pl.CostEstimate(
        flops=B * half_dim,                       # the broadcast multiply
        transcendentals=B * dim,                  # sin + cos
        bytes_accessed=B * 4 + half_dim * 4 + B * dim * itemsize,
    )

    return pl.pallas_call(
        kernel,
        out_shape=jax.ShapeDtypeStruct((B, dim), out_dtype),
        grid=grid,
        in_specs=[
            pl.BlockSpec((tile, 1), lambda i: (i, 0)),
            pl.BlockSpec((1, half_dim), lambda i: (0, 0)),  # grid-invariant
        ],
        out_specs=pl.BlockSpec((tile, dim), lambda i: (i, 0)),
        compiler_params=pltpu.CompilerParams(dimension_semantics=("parallel",)),
        cost_estimate=cost,
    )(t2d, freqs)


def _reference(time: jax.Array, dim: int) -> jax.Array:
    half_dim = dim // 2
    emb = math.log(10000.0) / (half_dim - 1)
    emb = jnp.exp(jnp.arange(half_dim, dtype=jnp.float32) * -emb)
    emb = time.astype(jnp.float32)[:, None] * emb[None, :]
    return jnp.concatenate([jnp.sin(emb), jnp.cos(emb)], axis=-1)


if __name__ == "__main__":
    key = jax.random.PRNGKey(0)
    k1, k2, k3, k4 = jax.random.split(key, 4)

    # Small, typical shape: 8 diffusion timesteps, dim=256 time embedding
    # (half_dim=128 -> lane-aligned split-store path).
    B, dim = 8, 256
    timesteps = jax.random.randint(k1, (B,), 0, 1000).astype(jnp.float32)

    out = jax.block_until_ready(sinusoidal_position_embeddings(timesteps, dim))
    ref = _reference(timesteps, dim)
    assert out.shape == (B, dim), out.shape
    # fp32 sin/cos with arguments up to ~1e3 are conditioning-limited to
    # ~1e-4 absolute; allow headroom for EUP-vs-XLA transcendental deltas.
    err = float(jnp.max(jnp.abs(out - ref)))
    assert err < 5e-3, f"max |diff| vs reference = {err}"

    # Tight check in the well-conditioned small-argument regime.
    t_small = jax.random.uniform(k2, (B,), minval=0.0, maxval=1.0)
    out_s = jax.block_until_ready(sinusoidal_position_embeddings(t_small, dim))
    err_s = float(jnp.max(jnp.abs(out_s - _reference(t_small, dim))))
    assert err_s < 1e-4, f"max |diff| (small args) = {err_s}"

    # Multi-block ragged path (no wrapper pad / slice): B not a multiple of
    # the tile, forced small tile so the boundary-block masking is exercised.
    B2 = 1000
    timesteps2 = jax.random.randint(k3, (B2,), 0, 1000).astype(jnp.float32)
    out2 = jax.block_until_ready(
        sinusoidal_position_embeddings(timesteps2, dim, max_tile=256))
    assert out2.shape == (B2, dim), out2.shape
    err2 = float(jnp.max(jnp.abs(out2 - _reference(timesteps2, dim))))
    assert err2 < 5e-3, f"max |diff| (tiled/ragged path) = {err2}"

    # Non-lane-aligned half_dim (dim=64 -> half_dim=32): full-block-store path.
    B3, dim3 = 8, 64
    timesteps3 = jax.random.randint(k4, (B3,), 0, 1000).astype(jnp.float32)
    out3 = jax.block_until_ready(
        sinusoidal_position_embeddings(timesteps3, dim3))
    err3 = float(jnp.max(jnp.abs(out3 - _reference(timesteps3, dim3))))
    assert out3.shape == (B3, dim3), out3.shape
    assert err3 < 5e-3, f"max |diff| (unaligned half_dim) = {err3}"

    print("KERNEL_OK")
</pallas_src>

<mosaic_0001>
module attributes {stable_mosaic.version = 11 : i64} {
  func.func @_sinusoidal_kernel(%arg0: i32, %arg1: memref<8x1xf32, #tpu.memory_space<vmem>>, %arg2: memref<1x128xf32, #tpu.memory_space<vmem>>, %arg3: memref<8x256xf32, #tpu.memory_space<vmem>>) attributes {dimension_semantics = [#tpu.dimension_semantics<parallel>], iteration_bounds = array<i64: 1>, scalar_prefetch = 0 : i64, scratch_operands = 0 : i64, tpu.core_type = #tpu.core_type<tc>, window_params = [{transform_indices = @transform_0, window_bounds = array<i64: 8, 1>}, {pipeline_mode = #tpu.pipeline_mode<synchronous>, transform_indices = @transform_1, window_bounds = array<i64: 1, 128>}, {transform_indices = @transform_2, window_bounds = array<i64: 8, 256>}]} {
    %c0 = arith.constant 0 : index
    %c0_0 = arith.constant 0 : index
    %0 = vector.load %arg1[%c0, %c0_0] : memref<8x1xf32, #tpu.memory_space<vmem>>, vector<8x1xf32>
    %c0_1 = arith.constant 0 : index
    %c0_2 = arith.constant 0 : index
    %1 = vector.load %arg2[%c0_1, %c0_2] : memref<1x128xf32, #tpu.memory_space<vmem>>, vector<1x128xf32>
    %2 = vector.broadcast %0 : vector<8x1xf32> to vector<8x128xf32>
    %3 = vector.broadcast %1 : vector<1x128xf32> to vector<8x128xf32>
    %4 = arith.mulf %2, %3 : vector<8x128xf32>
    %5 = math.sin %4 : vector<8x128xf32>
    %6 = math.cos %4 : vector<8x128xf32>
    %c0_3 = arith.constant 0 : index
    %c0_4 = arith.constant 0 : index
    %7 = vector.load %arg3[%c0_3, %c0_4] : memref<8x256xf32, #tpu.memory_space<vmem>>, vector<8x128xf32>
    tpu.vector_store %arg3[%c0_3, %c0_4], %5 {strides = array<i32>} : memref<8x256xf32, #tpu.memory_space<vmem>>, vector<8x128xf32>,
    %c0_5 = arith.constant 0 : index
    %c128 = arith.constant 128 : index
    %8 = vector.load %arg3[%c0_5, %c128] : memref<8x256xf32, #tpu.memory_space<vmem>>, vector<8x128xf32>
    tpu.vector_store %arg3[%c0_5, %c128], %6 {strides = array<i32>} : memref<8x256xf32, #tpu.memory_space<vmem>>, vector<8x128xf32>,
    return
  }
  func.func @transform_0(%arg0: i32) -> (i32, i32) {
    %c0_i32 = arith.constant 0 : i32
    %c0_i32_0 = arith.constant 0 : i32
    return %arg0, %c0_i32 : i32, i32
  }
  func.func @transform_1(%arg0: i32) -> (i32, i32) {
    %c0_i32 = arith.constant 0 : i32
    %c0_i32_0 = arith.constant 0 : i32
    %c0_i32_1 = arith.constant 0 : i32
    return %c0_i32, %c0_i32_0 : i32, i32
  }
  func.func @transform_2(%arg0: i32) -> (i32, i32) {
    %c0_i32 = arith.constant 0 : i32
    %c0_i32_0 = arith.constant 0 : i32
    return %arg0, %c0_i32 : i32, i32
  }
}

</mosaic_0001>

<bundles_post_ra>
// kernel: tpu_custom_call.1
= control target key start
LH: loop header
LB: loop body
LE: loop exit
PB: predicated region body
PF: predicated region fallthrough
CT: control target
= control target key end

     0   :  { %v297_v1 = vmov 0   ;;  %s350_s0 = inlined_call_operand.vmem [shape: f32[8,1], index: 0, kind: input, shape index: {}]   ;;  %s351_s1 = inlined_call_operand.vmem [shape: f32[1,128], index: 1, kind: input, shape index: {}]   ;;  %s352_s2 = inlined_call_operand.hbm [shape: f32[8,256], index: 2, kind: output, shape index: {}]  }
   0x1   :  { %v12_v0 = vld [vmem:[%s350_s0] sm:$0xff]  ;;  %270 = vset.pattern.permute.xlu0 %v297_v1 }
   0x2   :  { %16 = vperm.xlu0 %270, %v12_v0  }
   0x3   :  { %7 = vsyncpa [#allocation3], 0  ;;  %v249_v2 = vld [vmem:[%s351_s1] ss:$0 sm:$0xff]  ;;  %v298_v15 = vmov 683565275  }
   0x4   :  { %v299_v17 = vmov 2475754826   ;;  %v300_v20 = vmov 2131351028   ;;  %v301_v23 = vmov 2102212464  }
   0x5   :  { %v302_v26 = vmov 920167782   ;;  %v303_v29 = vmov 1326507024   ;;  %s304_s0 = smov [#allocation2]  }
   0x6   :  { %s241_s1 = sshll.u32 %s304_s0, 4  ;;  %s242_s1 = int_to_ptr.vmem [resolvable:$true] %s241_s1 }
   0x7   :  { %s275_s13 = scalar_lea.vmem %s242_s1, 256  ;;  %p280_p1 = scmp.lt.s32.totalorder %s242_s1, %s242_s1 }
   0x8   :  { %p276_p0 = scmp.ne.s32.totalorder %s242_s1, %s275_s13  ;;  %p281_p2 = scmp.lt.s32.totalorder %s275_s13, %s275_s13 }
   0xa   :  { %p282_p3 = por %p281_p2, %p280_p1 }
   0xc   :  { %p283_p4 = pnand %p282_p3, %p276_p0 }
  0x7d   :  { %v17_v3 = vpop.permute.xlu0 %16 }
  0x7e   :  { %v326_v4 = vmul.f32 %v249_v2, %v17_v3 }
  0x80   :  { %v29_v5 = vand.u32 2139095040, %v326_v4  ;;  %v26_v9 = vand.u32 2147483647, %v326_v4  ;;  %vm28_vm7 = vcmp.lt.s32.totalorder %v326_v4, 0  ;;  %vm118_vm15 = vweird.f32 %v326_v4 }
  0x82   :  { %v30_v6 = vshrl.u32 %v29_v5, 23  ;;  %v33_v12 = vand.u32 8388607, %v26_v9  ;;  %vm27_vm8 = vcmp.le.f32.partialorder %v26_v9, 0.7853982 }
  0x84   :  { %v250_v7 = vadd.s32 4294967169, %v30_v6  ;;  %v34_v31 = vor.u32 8388608, %v33_v12 }
  0x86   :  { %v36_v8 = vadd.s32 1, %v250_v7  ;;  %v74_v45 = vshll.u32 %v34_v31, 8 }
  0x88   :  { %vm37_vm0 = vcmp.gt.s32.totalorder %v36_v8, 0 }
  0x89   :  { %v38_v10 = vsel %vm37_vm0, %v36_v8, 0 }
  0x8a   :  { %v40_v11 = vand.u32 31, %v38_v10  ;;  %v39_v14 = vshrl.u32 %v38_v10, 5 }
  0x8c   :  { %v41_v13 = vsub.s32 32, %v40_v11  ;;  %v43_v16 = vshll.u32 %v298_v15, %v40_v11  ;;  %v46_v18 = vshll.u32 %v299_v17, %v40_v11  ;;  %v49_v22 = vshll.u32 %v300_v20, %v40_v11 }
  0x8d   :  { %v52_v25 = vshll.u32 %v301_v23, %v40_v11  ;;  %v55_v28 = vshll.u32 %v302_v26, %v40_v11  ;;  %vm58_vm1 = vcmp.lt.s32.totalorder %v39_v14, 1  ;;  %vm61_vm2 = vcmp.lt.s32.totalorder %v39_v14, 4 }
  0x8e   :  { %v44_v19 = vshrl.u32 %v299_v17, %v41_v13  ;;  %v47_v21 = vshrl.u32 %v300_v20, %v41_v13  ;;  %v50_v24 = vshrl.u32 %v301_v23, %v41_v13  ;;  %v53_v27 = vshrl.u32 %v302_v26, %v41_v13 }
  0x8f   :  { %v56_v30 = vshrl.u32 %v303_v29, %v41_v13  ;;  %v42_v40 = vshrl.u32 %v298_v15, %v41_v13  ;;  %vm60_vm3 = vcmp.lt.s32.totalorder %v39_v14, 3  ;;  %vm59_vm4 = vcmp.lt.s32.totalorder %v39_v14, 2 }
  0x90   :  { %v45_v32 = vor.u32 %v44_v19, %v43_v16  ;;  %v48_v33 = vor.u32 %v47_v21, %v46_v18  ;;  %v51_v34 = vor.u32 %v50_v24, %v49_v22  ;;  %v54_v35 = vor.u32 %v53_v27, %v52_v25 }
  0x91   :  { %v57_v36 = vor.u32 %v56_v30, %v55_v28 }
  0x92   :  { %v63_v37 = vsel %vm61_vm2, %v51_v34, 2102212464  ;;  %v66_v38 = vsel %vm58_vm1, %v45_v32, %v48_v33  ;;  %v70_v39 = vsel %vm58_vm1, %v48_v33, %v51_v34  ;;  %v67_v41 = vsel %vm61_vm2, %v54_v35, 920167782 }
  0x93   :  { %v71_v42 = vsel %vm61_vm2, %v57_v36, 1326507024  ;;  %v68_v43 = vsel %vm60_vm3, %v51_v34, %v67_v41  ;;  %v62_v46 = vsel %vm58_vm1, %v42_v40, %v45_v32  ;;  %v64_v47 = vsel %vm60_vm3, %v48_v33, %v63_v37 }
  0x94   :  { %v72_v44 = vsel %vm60_vm3, %v54_v35, %v71_v42  ;;  %v69_v48 = vsel %vm59_vm4, %v66_v38, %v68_v43  ;;  %v65_v54 = vsel %vm59_vm4, %v62_v46, %v64_v47 }
  0x95   :  { %v73_v49 = vsel %vm59_vm4, %v70_v39, %v72_v44  ;;  %v335_v52 = vmul.u32.u64.low %v74_v45, %v69_v48  ;;  %v336_v53 = vmul.u32.u64.high %v74_v45, %v69_v48, %v335_v52  ;;  %v81_v56 = vmul.u32 %v74_v45, %v65_v54 }
  0x96   :  { %v332_v50 = vmul.u32.u64.low %v74_v45, %v73_v49  ;;  %v333_v51 = vmul.u32.u64.high %v74_v45, %v73_v49, %v332_v50 }
  0x97   :  { %v84_v55 = vadd.s32 1, %v336_v53 }
  0x98   :  { %vm83_vm5 = vc.u32 %v333_v51, %v335_v52  ;;  %v82_v5 = vadd.s32 %v335_v52, %v333_v51 }
  0x99   :  { %v85_v57 = vsel %vm83_vm5, %v84_v55, %v336_v53 }
  0x9a   :  { %v86_v58 = vadd.s32 %v85_v57, %v81_v56 }
  0x9c   :  { %v87_v59 = vadd.s32 536870912, %v86_v58 }
  0x9e   :  { %v88_v60 = vshrl.u32 %v87_v59, 30 }
  0xa0   :  { %v89_v61 = vshll.u32 %v88_v60, 30  ;;  %v112_v19 = vsub.s32 4, %v88_v60 }
  0xa2   :  { %v90_v62 = vsub.s32 %v86_v58, %v89_v61  ;;  %v113_v22 = vsel %vm28_vm7, %v112_v19, %v88_v60 }
  0xa3   :  { %v115_v23 = vsel %vm27_vm8, 0, %v113_v22 }
  0xa4   :  { %v92_v63 = vsub.s32 0, %v90_v62  ;;  %v119_v24 = vadd.s32 3, %v115_v23  ;;  %v223_v26 = vand.u32 3, %v115_v23 }
  0xa6   :  { %v251_v0 = vmin.u32 %v92_v63, %v90_v62  ;;  %v120_v25 = vand.u32 3, %v119_v24  ;;  %vm228_vm10 = vcmp.eq.s32.totalorder %v223_v26, 2  ;;  %vm225_vm12 = vcmp.eq.s32.totalorder %v223_v26, 0 }
  0xa7   :  { %vm224_vm14 = vcmp.lt.s32.totalorder %v223_v26, 2 }
  0xa8   :  { %v94_v1 = vclz %v251_v0  ;;  %vm125_vm9 = vcmp.eq.s32.totalorder %v120_v25, 2  ;;  %vm122_vm11 = vcmp.eq.s32.totalorder %v120_v25, 0  ;;  %vm121_vm13 = vcmp.lt.s32.totalorder %v120_v25, 2 }
  0xaa   :  { %v252_v2 = vadd.s32 4294967294, %v94_v1 }
  0xac   :  { %vm253_vm6 = vcmp.lt.s32.totalorder %v252_v2, 0 }
  0xad   :  { %v97_v3 = vsel %vm253_vm6, 0, %v252_v2 }
  0xae   :  { %v98_v6 = vsub.s32 32, %v97_v3  ;;  %v102_v7 = vsub.s32 4294967266, %v97_v3  ;;  %v99_v8 = vshll.u32 %v90_v62, %v97_v3 }
  0xb0   :  { %v100_v10 = vshrl.u32 %v82_v5, %v98_v6  ;;  %v103_v11 = vadd.s32 127, %v102_v7 }
  0xb2   :  { %v101_v12 = vor.u32 %v100_v10, %v99_v8  ;;  %v104_v13 = vshll.u32 %v103_v11, 23 }
  0xb4   :  { %v105_v14 = vor.u32 4788187, %v104_v13  ;;  %v108_v16 = vcvt.s32.f32 %v101_v12 }
  0xb6   :  { %v106_v15 = vand.u32 2147483647, %v105_v14 }
  0xb8   :  { %v109_v17 = vmul.f32 %v108_v16, %v106_v15 }
  0xba   :  { %v110_v18 = vxor.u32 2147483648, %v109_v17 }
  0xbc   :  { %v111_v20 = vsel %vm28_vm7, %v110_v18, %v109_v17 }
  0xbd   :  { %v114_v21 = vsel %vm27_vm8, %v326_v4, %v111_v20 }
  0xbe   :  { %271 = vcosq.f32 %v114_v21 }
  0xbf   :  { %273 = vsinq.f32 %v114_v21 }
  0xcb   :  { %v272_v27 = vpop.eup %271 }
  0xcc   :  { %v274_v28 = vpop.eup %273  ;;  %v126_v29 = vxor.u32 2147483648, %v272_v27 }
  0xcd   :  { %v123_v30 = vxor.u32 2147483648, %v274_v28 }
  0xce   :  { %v127_v9 = vsel %vm125_vm9, %v126_v29, %v274_v28  ;;  %v230_v31 = vsel %vm228_vm10, %v126_v29, %v274_v28 }
  0xcf   :  { %v124_v32 = vsel %vm122_vm11, %v272_v27, %v123_v30  ;;  %v227_v33 = vsel %vm225_vm12, %v272_v27, %v123_v30 }
  0xd0   :  { %v128_v34 = vsel %vm121_vm13, %v124_v32, %v127_v9  ;;  %v231_v35 = vsel %vm224_vm14, %v227_v33, %v230_v31 }
  0xd1   :  { %v129_v36 = vsel %vm118_vm15, nan, %v128_v34  ;;  %v232_v37 = vsel %vm118_vm15, nan, %v231_v35 }
  0xd2   :  { %233 = vst [vmem:[#allocation2] sm:$0xff] %v129_v36  ;;  %234 = vst [vmem:[#allocation2 + $0x8] sm:$0xff] %v232_v37 }
  0xd3   :  { %286 = shalt.err (!%p283_p4)
}
  0xd4   :  { %244 = dma.vmem_to_hbm [thread:$0]  %s242_s1, 256, %s352_s2, [#allocation3]  }
  0xd5   :  { %295 = dma.done.wait [#allocation3], 256  }
  0xd6   :  { %296 = vsyncadd [#allocation3], 4294967040 }
  0xd7   :  { %248 = vsyncpa [#allocation3], 1 }

</bundles_post_ra>
